<compile_context>
chip_gen: v7x
topology: tpu7x:2x2x1
jax: 0.10.0
libtpu: 0.0.40
codegen_flags: <defaults>
</compile_context>

<pallas_src>
import jax
import jax.numpy as jnp
from jax.experimental import pallas as pl
from jax.experimental.pallas import tpu as pltpu


def _make_attention_kernel(n_valid):
    def attention_kernel(x_ref, m_ref, wvt_ref, o_ref):
        tb, n_pad, dp = x_ref.shape
        x = x_ref[...]                       # (tb, Np, Dp) in MXU dtype
        m = m_ref[...]                       # (Dp, Dp), includes the 1/sqrt(D) scale
        wvt = wvt_ref[...]                   # (Dp, Dp) == padded Wv.T

        # One full-width MXU matmul on the flattened rows.  Np % 8 == 0 and
        # Dp % 128 == 0, so this reshape is (8,128)-tile-aligned -> no VMEM relayout.
        xm = jnp.dot(x.reshape(tb * n_pad, dp), m,
                     preferred_element_type=jnp.float32).reshape(tb, n_pad, dp)
        # TODO(synk): for production N*D, chunk this contraction over 128-wide
        # columns of M with lax.fori_loop(unroll=True) to avoid the full f32 xm.

        x_f32 = x.astype(jnp.float32)
        s = jnp.sum(xm * x_f32, axis=-1)     # (tb, Np) scores, f32

        # Mask padded seq positions (static), then softmax over seq (torch dim=1).
        if n_valid != n_pad:
            seq_ids = jax.lax.broadcasted_iota(jnp.int32, (tb, n_pad), 1)
            s = jnp.where(seq_ids < n_valid, s, jnp.float32(-1e30))
        s = s - jnp.max(s, axis=-1, keepdims=True)
        e = jnp.exp(s)
        p = e / jnp.sum(e, axis=-1, keepdims=True)   # exact divide: only tb rows

        # Weighted seq reduction on the idle VPU/XLU slots (keeps the MXU free;
        # an M=1 batched matvec would waste 255/256 of the MXU rows).
        px = jnp.sum(p[:, :, None] * x_f32, axis=1)  # (tb, Dp) f32

        # V projection on the already-reduced rows: full-width MXU matmul.
        out = jnp.dot(px.astype(wvt.dtype), wvt, preferred_element_type=jnp.float32)
        o_ref[...] = out.astype(o_ref.dtype)         # (tb, Dp): lane-dense store

    return attention_kernel


def _pick_tb(batch, n_pad, d_pad, itemsize, target_bytes):
    """Largest batch tile (multiple of 8, divisor of batch) near ~target_bytes."""
    per_row = n_pad * d_pad * itemsize
    want = max(8, (target_bytes // max(per_row, 1)) // 8 * 8)
    if want >= batch or batch % 8 != 0:
        return batch                          # toy sizes: whole batch, grid=(1,)
    tb = min(want, batch)
    while tb > 8 and batch % tb != 0:
        tb -= 8
    return tb if batch % tb == 0 else batch


def attention_pallas(x, wq, wk, wv, *, target_tile_bytes=1 << 20, mxu_dtype=None):
    """x: (B, N, D); wq/wk/wv: (D, D) torch-style (out_features, in_features)."""
    B, N, D = x.shape
    if mxu_dtype is None:
        mxu_dtype = x.dtype   # explicit policy: bf16 input -> bf16 MXU inputs, f32 accum

    # One-time tiny (D x D) precomputes, done in f32.
    # TODO(synk): torch computes the 1/sqrt(dim) scale in float64; no f64 on TPU -> f32.
    m = (wq.astype(jnp.float32).T @ wk.astype(jnp.float32)) / jnp.sqrt(jnp.float32(D))

    # Lane/sublane padding: D -> multiple of 128 (lane-dense), N -> multiple of 8.
    Dp = -(-D // 128) * 128
    Np = -(-N // 8) * 8
    x_p = jnp.zeros((B, Np, Dp), mxu_dtype).at[:, :N, :D].set(x.astype(mxu_dtype))
    m_p = jnp.zeros((Dp, Dp), mxu_dtype).at[:D, :D].set(m.astype(mxu_dtype))
    wvt_p = jnp.zeros((Dp, Dp), mxu_dtype).at[:D, :D].set(wv.T.astype(mxu_dtype))

    itemsize = jnp.dtype(mxu_dtype).itemsize
    tb = _pick_tb(B, Np, Dp, itemsize, target_tile_bytes)
    grid = (B // tb,)

    # Explicit VMEM budget: double-buffered x tile + out tile + resident weights
    # + f32 intermediates, with 2x headroom, capped at v7x's 64 MiB physical VMEM.
    x_tile = tb * Np * Dp * itemsize
    out_tile = tb * Dp * jnp.dtype(x.dtype).itemsize
    weights = 2 * Dp * Dp * itemsize
    interm = tb * Np * Dp * 4 + tb * Dp * 4
    need = 2 * x_tile + 2 * out_tile + 2 * weights + interm
    vmem_limit = int(min(max(2 * need, 16 << 20), 64 << 20))

    out_p = pl.pallas_call(
        _make_attention_kernel(N),
        out_shape=jax.ShapeDtypeStruct((B, Dp), x.dtype),
        grid=grid,
        in_specs=[
            pl.BlockSpec((tb, Np, Dp), lambda i: (i, 0, 0)),  # x: pipelined over batch
            pl.BlockSpec((Dp, Dp), lambda i: (0, 0)),         # M: resident every step
            pl.BlockSpec((Dp, Dp), lambda i: (0, 0)),         # Wv.T: resident every step
        ],
        out_specs=pl.BlockSpec((tb, Dp), lambda i: (i, 0)),   # lane-dense output block
        compiler_params=pltpu.CompilerParams(
            dimension_semantics=("parallel",),                 # batch tiles independent
            vmem_limit_bytes=vmem_limit),
    )(x_p, m_p, wvt_p)

    return out_p[:, :D]


def attention_ref(x, wq, wk, wv):
    # Pure-JAX reference mirroring the torch forward exactly.
    d = x.shape[-1]
    q = x @ wq.T
    k = x @ wk.T
    v = x @ wv.T
    a = jnp.sum(q * k, axis=-1) / jnp.sqrt(jnp.float32(d))
    a = jax.nn.softmax(a, axis=1)
    return jnp.sum(a[..., None] * v, axis=1)


if __name__ == "__main__":
    B, N, D = 16, 8, 5   # dim=5 as in the module default

    key = jax.random.PRNGKey(0)
    kx, kq, kk, kv = jax.random.split(key, 4)

    x = jax.random.normal(kx, (B, N, D), dtype=jnp.float32)

    # deterministic in-script init, roughly torch's default uniform(-1/sqrt(in), 1/sqrt(in))
    bound = 1.0 / (D ** 0.5)
    wq = jax.random.uniform(kq, (D, D), jnp.float32, -bound, bound)
    wk = jax.random.uniform(kk, (D, D), jnp.float32, -bound, bound)
    wv = jax.random.uniform(kv, (D, D), jnp.float32, -bound, bound)

    out = attention_pallas(x, wq, wk, wv)
    jax.block_until_ready(out)

    ref = attention_ref(x, wq, wk, wv)
    assert out.shape == (B, D), out.shape
    # Exact softmax normalization + f32 accumulation -> tight tolerance.
    assert jnp.allclose(out, ref, atol=1e-5, rtol=1e-5), (out, ref)

    print("KERNEL_OK")
</pallas_src>

<mosaic_0001>
module attributes {stable_mosaic.version = 11 : i64} {
  func.func @attention_kernel(%arg0: i32, %arg1: memref<16x8x128xf32, #tpu.memory_space<vmem>>, %arg2: memref<128x128xf32, #tpu.memory_space<vmem>>, %arg3: memref<128x128xf32, #tpu.memory_space<vmem>>, %arg4: memref<16x128xf32, #tpu.memory_space<vmem>>) attributes {dimension_semantics = [#tpu.dimension_semantics<parallel>], iteration_bounds = array<i64: 1>, scalar_prefetch = 0 : i64, scratch_operands = 0 : i64, tpu.core_type = #tpu.core_type<tc>, window_params = [{transform_indices = @transform_0, window_bounds = array<i64: 16, 8, 128>}, {pipeline_mode = #tpu.pipeline_mode<synchronous>, transform_indices = @transform_1, window_bounds = array<i64: 128, 128>}, {pipeline_mode = #tpu.pipeline_mode<synchronous>, transform_indices = @transform_2, window_bounds = array<i64: 128, 128>}, {transform_indices = @transform_3, window_bounds = array<i64: 16, 128>}]} {
    %c0 = arith.constant 0 : index
    %c0_0 = arith.constant 0 : index
    %c0_1 = arith.constant 0 : index
    %0 = vector.load %arg1[%c0, %c0_0, %c0_1] : memref<16x8x128xf32, #tpu.memory_space<vmem>>, vector<16x8x128xf32>
    %c0_2 = arith.constant 0 : index
    %c0_3 = arith.constant 0 : index
    %1 = vector.load %arg2[%c0_2, %c0_3] : memref<128x128xf32, #tpu.memory_space<vmem>>, vector<128x128xf32>
    %c0_4 = arith.constant 0 : index
    %c0_5 = arith.constant 0 : index
    %2 = vector.load %arg3[%c0_4, %c0_5] : memref<128x128xf32, #tpu.memory_space<vmem>>, vector<128x128xf32>
    %3 = vector.shape_cast %0 : vector<16x8x128xf32> to vector<128x128xf32>
    %cst = arith.constant dense<0.000000e+00> : vector<128x128xf32>
    %4 = tpu.matmul %3, %1, %cst {dimension_numbers = #tpu.dot_dimension_numbers<[1], [0], [0], [1], [0, 0, 1, 1], [], []>} : vector<128x128xf32>, vector<128x128xf32>, vector<128x128xf32> -> vector<128x128xf32>
    %5 = vector.shape_cast %4 : vector<128x128xf32> to vector<16x8x128xf32>
    %6 = arith.mulf %5, %0 : vector<16x8x128xf32>
    %cst_6 = arith.constant dense<0.000000e+00> : vector<16x8xf32>
    %7 = vector.multi_reduction <add>, %6, %cst_6 [2] : vector<16x8x128xf32> to vector<16x8xf32>
    %cst_7 = arith.constant dense<0xFF800000> : vector<16xf32>
    %8 = vector.multi_reduction <maximumf>, %7, %cst_7 [1] : vector<16x8xf32> to vector<16xf32>
    %9 = vector.shape_cast %8 : vector<16xf32> to vector<16x1xf32>
    %10 = vector.broadcast %9 : vector<16x1xf32> to vector<16x8xf32>
    %11 = arith.subf %7, %10 : vector<16x8xf32>
    %12 = math.exp %11 : vector<16x8xf32>
    %cst_8 = arith.constant dense<0.000000e+00> : vector<16xf32>
    %13 = vector.multi_reduction <add>, %12, %cst_8 [1] : vector<16x8xf32> to vector<16xf32>
    %14 = vector.shape_cast %13 : vector<16xf32> to vector<16x1xf32>
    %15 = vector.broadcast %14 : vector<16x1xf32> to vector<16x8xf32>
    %16 = arith.divf %12, %15 : vector<16x8xf32>
    %17 = vector.shape_cast %16 : vector<16x8xf32> to vector<16x8x1xf32>
    %18 = vector.broadcast %17 : vector<16x8x1xf32> to vector<16x8x128xf32>
    %19 = arith.mulf %18, %0 : vector<16x8x128xf32>
    %cst_9 = arith.constant dense<0.000000e+00> : vector<16x128xf32>
    %20 = vector.multi_reduction <add>, %19, %cst_9 [1] : vector<16x8x128xf32> to vector<16x128xf32>
    %cst_10 = arith.constant dense<0.000000e+00> : vector<16x128xf32>
    %21 = tpu.matmul %20, %2, %cst_10 {dimension_numbers = #tpu.dot_dimension_numbers<[1], [0], [0], [1], [0, 0, 1, 1], [], []>} : vector<16x128xf32>, vector<128x128xf32>, vector<16x128xf32> -> vector<16x128xf32>
    %c0_11 = arith.constant 0 : index
    %c0_12 = arith.constant 0 : index
    %22 = vector.load %arg4[%c0_11, %c0_12] : memref<16x128xf32, #tpu.memory_space<vmem>>, vector<16x128xf32>
    tpu.vector_store %arg4[%c0_11, %c0_12], %21 {strides = array<i32>} : memref<16x128xf32, #tpu.memory_space<vmem>>, vector<16x128xf32>,
    return
  }
  func.func @transform_0(%arg0: i32) -> (i32, i32, i32) {
    %c0_i32 = arith.constant 0 : i32
    %c0_i32_0 = arith.constant 0 : i32
    %c0_i32_1 = arith.constant 0 : i32
    return %arg0, %c0_i32, %c0_i32_0 : i32, i32, i32
  }
  func.func @transform_1(%arg0: i32) -> (i32, i32) {
    %c0_i32 = arith.constant 0 : i32
    %c0_i32_0 = arith.constant 0 : i32
    %c0_i32_1 = arith.constant 0 : i32
    return %c0_i32, %c0_i32_0 : i32, i32
  }
  func.func @transform_2(%arg0: i32) -> (i32, i32) {
    %c0_i32 = arith.constant 0 : i32
    %c0_i32_0 = arith.constant 0 : i32
    %c0_i32_1 = arith.constant 0 : i32
    return %c0_i32, %c0_i32_0 : i32, i32
  }
  func.func @transform_3(%arg0: i32) -> (i32, i32) {
    %c0_i32 = arith.constant 0 : i32
    %c0_i32_0 = arith.constant 0 : i32
    return %arg0, %c0_i32 : i32, i32
  }
}

</mosaic_0001>

<bundles_post_ra>
// kernel: tpu_custom_call.1
= control target key start
LH: loop header
LB: loop body
LE: loop exit
PB: predicated region body
PF: predicated region fallthrough
CT: control target
= control target key end

     0   :  { %8 = vsyncpa [#allocation3], 0  ;;  %s1931_s0 = inlined_call_operand.hbm [shape: f32[16,8,128], index: 0, kind: input, shape index: {}]   ;;  %s1932_s1 = inlined_call_operand.hbm [shape: f32[128,128], index: 1, kind: input, shape index: {}]   ;;  %s1933_s2 = inlined_call_operand.hbm [shape: f32[128,128], index: 2, kind: input, shape index: {}]   ;;  %s1934_s3 = inlined_call_operand.hbm [shape: f32[16,128], index: 3, kind: output, shape index: {}]  }
   0x1   :  { %9 = vsyncpa [#allocation6], 0 }
   0x2   :  { %10 = vsyncpa [#allocation4], 0  ;;  %s1494_s12 = smov [#allocation5]   ;;  %s1495_s14 = smov [#allocation2]  }
   0x3   :  { %s28_s13 = sshll.u32 %s1494_s12, 4  ;;  %s16_s15 = sshll.u32 %s1495_s14, 4  ;;  %s29_s13 = int_to_ptr.vmem [resolvable:$true] %s28_s13  ;;  %s1521_s15 = int_to_ptr.vmem [resolvable:$true] %s16_s15 }
   0x4   :  { %s1400_s18 = scalar_lea.hbm %s1932_s1, 2048 }
   0x5   :  { %p1401_p0 = scmp.ne.s32.totalorder %s1932_s1, %s1400_s18  ;;  %p1404_p1 = scmp.lt.u32.totalorder %s1400_s18, %s1932_s1 }
   0x7   :  { %p1406_p2 = pnand %p1404_p1, %p1401_p0 }
   0x9   :  { %1409 = shalt.err (!%p1406_p2)
}
   0xa   :  { %s1410_s23 = scalar_lea.vmem %s29_s13, 2048  ;;  %p1415_p4 = scmp.lt.s32.totalorder %s29_s13, %s29_s13 }
   0xb   :  { %p1411_p3 = scmp.ne.s32.totalorder %s29_s13, %s1410_s23  ;;  %p1416_p5 = scmp.lt.s32.totalorder %s1410_s23, %s1410_s23 }
   0xd   :  { %p1417_p6 = por %p1416_p5, %p1415_p4 }
   0xf   :  { %p1418_p7 = pnand %p1417_p6, %p1411_p3 }
  0x11   :  { %1421 = shalt.err (!%p1418_p7)
}
  0x12   :  { %s1496_s24 = smov 128   ;;  %s1497_s25 = smov 8  }
  0x13   :  { %34 = dma.hbm_to_vmem [thread:$0]  %s1932_s1, 2048, %s29_s13, [#allocation6], %s1496_s24, %s1496_s24, %s1497_s25  }
  0x14   :  { %s1422_s30 = scalar_lea.hbm %s1931_s0, 2048 }
  0x15   :  { %p1423_p8 = scmp.ne.s32.totalorder %s1931_s0, %s1422_s30  ;;  %p1426_p9 = scmp.lt.u32.totalorder %s1422_s30, %s1931_s0 }
  0x17   :  { %p1428_p10 = pnand %p1426_p9, %p1423_p8 }
  0x19   :  { %1431 = shalt.err (!%p1428_p10)
}
  0x1a   :  { %s1432_s8 = scalar_lea.vmem %s1521_s15, 2048  ;;  %p1437_p12 = scmp.lt.s32.totalorder %s1521_s15, %s1521_s15 }
  0x1b   :  { %p1433_p11 = scmp.ne.s32.totalorder %s1521_s15, %s1432_s8  ;;  %p1438_p13 = scmp.lt.s32.totalorder %s1432_s8, %s1432_s8 }
  0x1d   :  { %p1439_p0 = por %p1438_p13, %p1437_p12 }
  0x1f   :  { %p1440_p1 = pnand %p1439_p0, %p1433_p11 }
  0x21   :  { %1443 = shalt.err (!%p1440_p1)
}
  0x22   :  { %22 = dma.hbm_to_vmem [thread:$0]  %s1931_s0, 2048, %s1521_s15, [#allocation3], %s1496_s24, %s1496_s24, %s1497_s25  }
  0x23   :  { %s1498_s10 = smov [#allocation7]   ;;  %s1444_s14 = scalar_lea.hbm %s1933_s2, 2048 }
  0x24   :  { %s40_s11 = sshll.u32 %s1498_s10, 4  ;;  %p1445_p2 = scmp.ne.s32.totalorder %s1933_s2, %s1444_s14  ;;  %s41_s11 = int_to_ptr.vmem [resolvable:$true] %s40_s11 }
  0x25   :  { %p1448_p3 = scmp.lt.u32.totalorder %s1444_s14, %s1933_s2 }
  0x27   :  { %p1450_p4 = pnand %p1448_p3, %p1445_p2 }
  0x29   :  { %1453 = shalt.err (!%p1450_p4)
}
  0x2a   :  { %s1454_s20 = scalar_lea.vmem %s41_s11, 2048  ;;  %p1459_p6 = scmp.lt.s32.totalorder %s41_s11, %s41_s11 }
  0x2b   :  { %p1455_p5 = scmp.ne.s32.totalorder %s41_s11, %s1454_s20  ;;  %p1460_p7 = scmp.lt.s32.totalorder %s1454_s20, %s1454_s20 }
  0x2d   :  { %p1461_p8 = por %p1460_p7, %p1459_p6 }
  0x2f   :  { %p1462_p9 = pnand %p1461_p8, %p1455_p5 }
  0x31   :  { %1465 = shalt.err (!%p1462_p9)
}
  0x32   :  { %46 = dma.hbm_to_vmem [thread:$0]  %s1933_s2, 2048, %s41_s11, [#allocation6], %s1496_s24, %s1496_s24, %s1497_s25  }
  0x33   :  { %1488 = dma.done.wait [#allocation3], 2048  }
  0x34   :  { %1489 = vsyncadd [#allocation3], 4294965248 }
  0x35   :  { %1490 = dma.done.wait [#allocation6], 4096  }
  0x36   :  { %1491 = vsyncadd [#allocation6], 4294963200  ;;  %v72_v0 = vld [vmem:[#allocation5] sm:$0xff]  ;;  %v73_v1 = vld [vmem:[#allocation5 + $0x8] sm:$0xff]  ;;  %vm379_vm0 = vcmask 1041409   ;;  %vm381_vm1 = vcmask 1042434  }
  0x37   :  { %v74_v2 = vld [vmem:[#allocation5 + $0x10] sm:$0xff]  ;;  %v1263_v3 = vpack.c.bf16 %v73_v1, %v72_v0  ;;  %v75_v4 = vld [vmem:[#allocation5 + $0x18] sm:$0xff]  ;;  %v76_v6 = vld [vmem:[#allocation5 + $0x20] sm:$0xff]  ;;  %vm383_vm2 = vcmask 1043459   ;;  %vm385_vm3 = vcmask 1044484   ;;  %vm387_vm4 = vcmask 1045509  }
  0x38   :  { %v1267_v5 = vpack.c.bf16 %v75_v4, %v74_v2  ;;  %v77_v7 = vld [vmem:[#allocation5 + $0x28] sm:$0xff]  ;;  %v1573_v9 = vld [vmem:[#allocation2] sm:$0xff]  ;;  %v78_v10 = vld [vmem:[#allocation5 + $0x30] sm:$0xff]  ;;  %vm389_vm5 = vcmask 1046534   ;;  %vm391_vm6 = vcmask 1047559   ;;  %vm402_vm7 = vcmask 64512  }
  0x39   :  { %1264 = vmatprep.subr.bf16.mxu0 %v1263_v3  ;;  %v1271_v8 = vpack.c.bf16 %v77_v7, %v76_v6  ;;  %v79_v11 = vld [vmem:[#allocation5 + $0x38] sm:$0xff]  ;;  %1204 = vmatprep.mubr.f32.mxu0 %v1573_v9  ;;  %v80_v13 = vld [vmem:[#allocation5 + $0x40] sm:$0xff]  ;;  %v81_v14 = vld [vmem:[#allocation5 + $0x48] sm:$0xff]  ;;  %s1500_s2 = smov [#allocation8]  }
  0x3a   :  { %1266 = vmatpush3.bf16.msra.mxu0 %v1263_v3  ;;  %v1275_v12 = vpack.c.bf16 %v79_v11, %v78_v10  ;;  %v1279_v15 = vpack.c.bf16 %v81_v14, %v80_v13  ;;  %v82_v16 = vld [vmem:[#allocation5 + $0x50] sm:$0xff]  ;;  %v83_v17 = vld [vmem:[#allocation5 + $0x58] sm:$0xff]  ;;  %v84_v19 = vld [vmem:[#allocation5 + $0x60] sm:$0xff]  ;;  %v313_v11 = vlaneseq  ;;  %s1109_s21 = sshll.u32 %s1500_s2, 4  ;;  %s1110_s21 = int_to_ptr.vmem [resolvable:$true] %s1109_s21 }
  0x3b   :  { %1268 = vmatprep.subr.bf16.mxu0 %v1267_v5  ;;  %v1283_v18 = vpack.c.bf16 %v83_v17, %v82_v16  ;;  %v85_v20 = vld [vmem:[#allocation5 + $0x68] sm:$0xff]  ;;  %v86_v22 = vld [vmem:[#allocation5 + $0x70] sm:$0xff]  ;;  %v87_v23 = vld [vmem:[#allocation5 + $0x78] sm:$0xff]  ;;  %s1466_s22 = scalar_lea.vmem %s1110_s21, 256  ;;  %p1471_p11 = scmp.lt.s32.totalorder %s1110_s21, %s1110_s21 }
  0x3c   :  { %v1287_v21 = vpack.c.bf16 %v85_v20, %v84_v19  ;;  %v1291_v24 = vpack.c.bf16 %v87_v23, %v86_v22  ;;  %v1576_v25 = vld [vmem:[#allocation2 + $0x8] sm:$0xff]  ;;  %v1578_v26 = vld [vmem:[#allocation2 + $0x10] sm:$0xff]  ;;  %v1582_v27 = vld [vmem:[#allocation2 + $0x18] sm:$0xff]  ;;  %v314_v13 = vand.u32 127, %v313_v11  ;;  %v1643_v14 = vshrl.u32 %v313_v11, 7  ;;  %p1467_p10 = scmp.ne.s32.totalorder %s1110_s21, %s1466_s22  ;;  %p1472_p12 = scmp.lt.s32.totalorder %s1466_s22, %s1466_s22 }
  0x3d   :  { %v1584_v28 = vld [vmem:[#allocation2 + $0x20] sm:$0xff]  ;;  %v1588_v29 = vld [vmem:[#allocation2 + $0x28] sm:$0xff]  ;;  %v1590_v30 = vld [vmem:[#allocation2 + $0x30] sm:$0xff] }
  0x3e   :  { %1270 = vmatpush3.bf16.msra.mxu0 %v1267_v5  ;;  %v1594_v31 = vld [vmem:[#allocation2 + $0x38] sm:$0xff]  ;;  %v1596_v32 = vld [vmem:[#allocation2 + $0x40] sm:$0xff]  ;;  %v1600_v33 = vld [vmem:[#allocation2 + $0x48] sm:$0xff]  ;;  %v1650_v17 = vsub.s32 %v314_v13, %v1643_v14  ;;  %p1473_p13 = por %p1472_p12, %p1471_p11 }
  0x3f   :  { %1272 = vmatprep.subr.bf16.mxu0 %v1271_v8  ;;  %v1602_v34 = vld [vmem:[#allocation2 + $0x50] sm:$0xff]  ;;  %v1606_v35 = vld [vmem:[#allocation2 + $0x58] sm:$0xff]  ;;  %v1608_v36 = vld [vmem:[#allocation2 + $0x60] sm:$0xff] }
  0x40   :  { %v1612_v37 = vld [vmem:[#allocation2 + $0x68] sm:$0xff]  ;;  %v1614_v38 = vld [vmem:[#allocation2 + $0x70] sm:$0xff]  ;;  %v1618_v39 = vld [vmem:[#allocation2 + $0x78] sm:$0xff]  ;;  %p1474_p0 = pnand %p1473_p13, %p1467_p10 }
  0x42   :  { %1274 = vmatpush3.bf16.msra.mxu0 %v1271_v8 }
  0x43   :  { %1276 = vmatprep.subr.bf16.mxu0 %v1275_v12 }
  0x46   :  { %1278 = vmatpush3.bf16.msra.mxu0 %v1275_v12 }
  0x47   :  { %1280 = vmatprep.subr.bf16.mxu0 %v1279_v15 }
  0x4a   :  { %1282 = vmatpush3.bf16.msra.mxu0 %v1279_v15 }
  0x4b   :  { %1284 = vmatprep.subr.bf16.mxu0 %v1283_v18 }
  0x4e   :  { %1286 = vmatpush3.bf16.msra.mxu0 %v1283_v18 }
  0x4f   :  { %1288 = vmatprep.subr.bf16.mxu0 %v1287_v21 }
  0x52   :  { %1290 = vmatpush3.bf16.msra.mxu0 %v1287_v21 }
  0x53   :  { %1292 = vmatprep.subr.bf16.mxu0 %v1291_v24 }
  0x56   :  { %1294 = vmatpush3.bf16.msra.mxu0 %v1291_v24 }
  0x59   :  { %1205 = vmatmul.mubr.f32.vlgmr.msra.gmra.mrb[0].mxu0 %v1576_v25 }
  0x5a   :  { %1207 = vmatprep.mubr.f32.mxu0 %v1578_v26 }
  0x5d   :  { %1208 = vmatmul.mubr.f32.gmra.mrb[2].mxu0 %v1582_v27 }
  0x5e   :  { %1210 = vmatprep.mubr.f32.mxu0 %v1584_v28 }
  0x61   :  { %1211 = vmatmul.mubr.f32.gmra.mrb[4].mxu0 %v1588_v29 }
  0x62   :  { %1213 = vmatprep.mubr.f32.mxu0 %v1590_v30 }
  0x65   :  { %1214 = vmatmul.mubr.f32.gmra.mrb[6].mxu0 %v1594_v31 }
  0x66   :  { %1216 = vmatprep.mubr.f32.mxu0 %v1596_v32 }
  0x69   :  { %1217 = vmatmul.mubr.f32.gmra.mrb[8].mxu0 %v1600_v33 }
  0x6a   :  { %1219 = vmatprep.mubr.f32.mxu0 %v1602_v34 }
  0x6d   :  { %1220 = vmatmul.mubr.f32.gmra.mrb[10].mxu0 %v1606_v35 }
  0x6e   :  { %1222 = vmatprep.mubr.f32.mxu0 %v1608_v36 }
  0x71   :  { %1223 = vmatmul.mubr.f32.gmra.mrb[12].mxu0 %v1612_v37 }
  0x72   :  { %1225 = vmatprep.mubr.f32.mxu0 %v1614_v38 }
  0x75   :  { %1226 = vmatmul.mubr.f32.gmra.mrb[14].mxu0 %v1618_v39 }
 0x12c   :  { %v1206_v40 = vpop.f32.mrb[0].mxu0 }
 0x12d   :  { %v170_v41 = vpop.f32.mrb[1].mxu0  ;;  %v250_v42 = vmul.f32 %v1206_v40, %v1576_v25 }
 0x12e   :  { %v249_v44 = vmul.f32 %v170_v41, %v1573_v9 }
 0x12f   :  { %267 = vadd.xlane.f32.xlu0 %v250_v42 }
 0x130   :  { %v1209_v43 = vpop.f32.mrb[2].mxu0 }
 0x131   :  { %v180_v45 = vpop.f32.mrb[3].mxu0  ;;  %v252_v46 = vmul.f32 %v1209_v43, %v1582_v27 }
 0x132   :  { %v251_v48 = vmul.f32 %v180_v45, %v1578_v26 }
 0x133   :  { %265 = vadd.xlane.f32.xlu0 %v249_v44  ;;  %271 = vadd.xlane.f32.xlu1 %v252_v46 }
 0x134   :  { %v1212_v47 = vpop.f32.mrb[4].mxu0 }
 0x135   :  { %v190_v49 = vpop.f32.mrb[5].mxu0  ;;  %v254_v50 = vmul.f32 %v1212_v47, %v1588_v29 }
 0x136   :  { %v253_v54 = vmul.f32 %v190_v49, %v1584_v28 }
 0x137   :  { %269 = vadd.xlane.f32.xlu1 %v251_v48 }
 0x138   :  { %v1215_v51 = vpop.f32.mrb[6].mxu0 }
 0x139   :  { %v200_v52 = vpop.f32.mrb[7].mxu0  ;;  %v256_v3 = vmul.f32 %v1215_v51, %v1594_v31 }
 0x13a   :  { %v255_v57 = vmul.f32 %v200_v52, %v1590_v30 }
 0x13b   :  { %275 = vadd.xlane.f32.xlu1 %v254_v50 }
 0x13c   :  { %v1218_v53 = vpop.f32.mrb[8].mxu0 }
 0x13d   :  { %v258_v55 = vmul.f32 %v1218_v53, %v1600_v33  ;;  %v210_v56 = vpop.f32.mrb[9].mxu0 }
 0x13e   :  { %v257_v61 = vmul.f32 %v210_v56, %v1596_v32 }
 0x13f   :  { %273 = vadd.xlane.f32.xlu1 %v253_v54  ;;  %283 = vadd.xlane.f32.xlu0 %v258_v55 }
 0x140   :  { %v1221_v58 = vpop.f32.mrb[10].mxu0 }
 0x141   :  { %v260_v59 = vmul.f32 %v1221_v58, %v1606_v35  ;;  %v220_v60 = vpop.f32.mrb[11].mxu0 }
 0x142   :  { %v259_v62 = vmul.f32 %v220_v60, %v1602_v34 }
 0x143   :  { %277 = vadd.xlane.f32.xlu1 %v255_v57  ;;  %287 = vadd.xlane.f32.xlu0 %v260_v59 }
 0x144   :  { %v1224_v63 = vpop.f32.mrb[12].mxu0 }
 0x145   :  { %v230_v0 = vpop.f32.mrb[13].mxu0  ;;  %v262_v1 = vmul.f32 %v1224_v63, %v1612_v37 }
 0x146   :  { %v261_v5 = vmul.f32 %v230_v0, %v1608_v36 }
 0x147   :  { %281 = vadd.xlane.f32.xlu1 %v257_v61  ;;  %285 = vadd.xlane.f32.xlu0 %v259_v62 }
 0x148   :  { %v1227_v2 = vpop.f32.mrb[14].mxu0 }
 0x149   :  { %v240_v4 = vpop.f32.mrb[15].mxu0  ;;  %v264_v6 = vmul.f32 %v1227_v2, %v1618_v39 }
 0x14a   :  { %v263_v7 = vmul.f32 %v240_v4, %v1614_v38 }
 0x14b   :  { %279 = vadd.xlane.f32.xlu1 %v256_v3  ;;  %291 = vadd.xlane.f32.xlu0 %v262_v1 }
 0x14f   :  { %289 = vadd.xlane.f32.xlu0 %v261_v5  ;;  %295 = vadd.xlane.f32.xlu1 %v264_v6 }
 0x153   :  { %293 = vadd.xlane.f32.xlu0 %v263_v7 }
 0x1bc   :  { %v1639_v10 = vpop.xlane.xlu0 %267 }
 0x1bd   :  { %v322_v22 = vrot.slane %v1639_v10, %v1650_v17 }
 0x1c0   :  { %v1637_v8 = vpop.xlane.xlu1 %271  ;;  %v1645_v15 = vpop.xlane.xlu0 %265 }
 0x1c1   :  { %v318_v20 = vrot.slane %v1645_v15, %v1650_v17  ;;  %v330_v43 = vrot.slane %v1637_v8, %v1650_v17 }
 0x1c3   :  { %v380_v40 = vsel %vm379_vm0, %v322_v22, %v318_v20  ;;  %v1499_v22 = vmov 0  }
 0x1c4   :  { %v1641_v12 = vpop.xlane.xlu1 %269  ;;  %1335 = vset.pattern.permute.xlu1 %v1499_v22  ;;  %1334 = vset.pattern.permute.xlu0 %v1499_v22 }
 0x1c5   :  { %v326_v21 = vrot.slane %v1641_v12, %v1650_v17 }
 0x1c7   :  { %v382_v41 = vsel %vm381_vm1, %v326_v21, %v380_v40  ;;  %v1720_v40 = vsub.s32 0, %v1643_v14 }
 0x1c8   :  { %v1647_v16 = vpop.xlane.xlu1 %275  ;;  %v384_v47 = vsel %vm383_vm2, %v330_v43, %v382_v41  ;;  %v1723_v41 = vsub.s32 1, %v1643_v14  ;;  %v1729_v43 = vsub.s32 5, %v1643_v14 }
 0x1c9   :  { %v338_v51 = vrot.slane %v1647_v16, %v1650_v17 }
 0x1cc   :  { %v1652_v18 = vpop.xlane.xlu1 %273  ;;  %v1654_v19 = vpop.xlane.xlu0 %283 }
 0x1cd   :  { %v334_v42 = vrot.slane %v1652_v18, %v1650_v17  ;;  %v354_v44 = vrot.slane %v1654_v19, %v1650_v17 }
 0x1cf   :  { %v386_v49 = vsel %vm385_vm3, %v334_v42, %v384_v47  ;;  %v1726_v42 = vsub.s32 2, %v1643_v14  ;;  %v1735_v47 = vsub.s32 6, %v1643_v14 }
 0x1d0   :  { %v1662_v23 = vpop.xlane.xlu1 %277  ;;  %v1664_v24 = vpop.xlane.xlu0 %287  ;;  %v388_v57 = vsel %vm387_vm4, %v338_v51, %v386_v49 }
 0x1d1   :  { %v342_v50 = vrot.slane %v1662_v23, %v1650_v17  ;;  %v362_v58 = vrot.slane %v1664_v24, %v1650_v17 }
 0x1d3   :  { %v390_v59 = vsel %vm389_vm5, %v342_v50, %v388_v57 }
 0x1d4   :  { %v1674_v45 = vpop.xlane.xlu1 %281  ;;  %v1676_v46 = vpop.xlane.xlu0 %285 }
 0x1d5   :  { %v350_v48 = vrot.slane %v1674_v45, %v1650_v17  ;;  %v358_v52 = vrot.slane %v1676_v46, %v1650_v17 }
 0x1d7   :  { %v393_v53 = vsel %vm379_vm0, %v354_v44, %v350_v48  ;;  %v1732_v44 = vsub.s32 3, %v1643_v14 }
 0x1d8   :  { %v1689_v54 = vpop.xlane.xlu1 %279  ;;  %v1691_v55 = vpop.xlane.xlu0 %291  ;;  %v394_v60 = vsel %vm381_vm1, %v358_v52, %v393_v53  ;;  %v1741_v52 = vsub.s32 4, %v1643_v14 }
 0x1d9   :  { %v346_v56 = vrot.slane %v1689_v54, %v1650_v17  ;;  %v370_v2 = vrot.slane %v1691_v55, %v1650_v17  ;;  %v395_v3 = vsel %vm383_vm2, %v362_v58, %v394_v60  ;;  %v1749_v60 = vsub.s32 7, %v1643_v14 }
 0x1db   :  { %v392_v61 = vsel %vm391_vm6, %v346_v56, %v390_v59 }
 0x1dc   :  { %v1701_v62 = vpop.xlane.xlu0 %289  ;;  %v403_v63 = vsel %vm402_vm7, %v392_v61, -inf  ;;  %v296_v1 = vpop.xlane.xlu1 %295 }
 0x1dd   :  { %v366_v0 = vrot.slane %v1701_v62, %v1650_v17  ;;  %404 = vmax.xlane.f32.xlu0 %v403_v63  ;;  %v378_v6 = vrot.slane %v296_v1, %v1650_v17 }
 0x1df   :  { %v396_v4 = vsel %vm385_vm3, %v366_v0, %v395_v3 }
 0x1e0   :  { %v1710_v5 = vpop.xlane.xlu0 %293  ;;  %v397_v11 = vsel %vm387_vm4, %v370_v2, %v396_v4 }
 0x1e1   :  { %v374_v7 = vrot.slane %v1710_v5, %v1650_v17 }
 0x1e3   :  { %v398_v13 = vsel %vm389_vm5, %v374_v7, %v397_v11 }
 0x1e4   :  { %v399_v20 = vsel %vm391_vm6, %v378_v6, %v398_v13 }
 0x1e5   :  { %v406_v21 = vsel %vm402_vm7, %v399_v20, -inf }
 0x1e6   :  { %407 = vmax.xlane.f32.xlu1 %v406_v21 }
 0x26a   :  { %v405_v48 = vpop.xlane.xlu0 %404 }
 0x26b   :  { %v414_v49 = vrot.slane %v405_v48, %v1720_v40  ;;  %v418_v50 = vrot.slane %v405_v48, %v1723_v41  ;;  %v422_v51 = vrot.slane %v405_v48, %v1726_v42  ;;  %v434_v53 = vrot.slane %v405_v48, %v1729_v43 }
 0x26c   :  { %v426_v56 = vrot.slane %v405_v48, %v1732_v44  ;;  %v438_v61 = vrot.slane %v405_v48, %v1735_v47  ;;  %v430_v3 = vrot.slane %v405_v48, %v1741_v52 }
 0x26d   :  { %v491_v57 = vsub.f32 %v1645_v15, %v414_v49  ;;  %v492_v58 = vsub.f32 %v1639_v10, %v418_v50  ;;  %v493_v59 = vsub.f32 %v1641_v12, %v422_v51  ;;  %v496_v63 = vsub.f32 %v1647_v16, %v434_v53 }
 0x26e   :  { %v494_v4 = vsub.f32 %v1637_v8, %v426_v56  ;;  %v442_v15 = vrot.slane %v405_v48, %v1749_v60  ;;  %v497_v10 = vsub.f32 %v1662_v23, %v438_v61  ;;  %v495_v7 = vsub.f32 %v1652_v18, %v430_v3 }
 0x26f   :  { %v507_v0 = vmul.f32 1.442695, %v491_v57  ;;  %v509_v2 = vmul.f32 1.442695, %v492_v58  ;;  %v511_v6 = vmul.f32 1.442695, %v493_v59 }
 0x270   :  { %v517_v12 = vmul.f32 1.442695, %v496_v63  ;;  %v513_v11 = vmul.f32 1.442695, %v494_v4  ;;  %v498_v13 = vsub.f32 %v1689_v54, %v442_v15  ;;  %v519_v20 = vmul.f32 1.442695, %v497_v10 }
 0x271   :  { %1336 = vpow2.f32 %v507_v0  ;;  %v515_v21 = vmul.f32 1.442695, %v495_v7 }
 0x272   :  { %1338 = vpow2.f32 %v509_v2  ;;  %v521_v23 = vmul.f32 1.442695, %v498_v13 }
 0x273   :  { %v408_v14 = vpop.xlane.xlu1 %407  ;;  %1340 = vpow2.f32 %v511_v6 }
 0x274   :  { %v446_v16 = vrot.slane %v408_v14, %v1720_v40  ;;  %1342 = vpow2.f32 %v517_v12  ;;  %v474_v8 = vrot.slane %v408_v14, %v1749_v60  ;;  %v450_v48 = vrot.slane %v408_v14, %v1723_v41 }
 0x275   :  { %1344 = vpow2.f32 %v513_v11  ;;  %v454_v51 = vrot.slane %v408_v14, %v1726_v42 }
 0x276   :  { %v499_v22 = vsub.f32 %v1674_v45, %v446_v16  ;;  %1346 = vpow2.f32 %v519_v20  ;;  %v506_v49 = vsub.f32 %v296_v1, %v474_v8  ;;  %v500_v45 = vsub.f32 %v1654_v19, %v450_v48 }
 0x277   :  { %1348 = vpow2.f32 %v515_v21  ;;  %v458_v1 = vrot.slane %v408_v14, %v1732_v44  ;;  %v501_v58 = vsub.f32 %v1676_v46, %v454_v51  ;;  %v462_v19 = vrot.slane %v408_v14, %v1741_v52 }
 0x278   :  { %v523_v54 = vmul.f32 1.442695, %v499_v22  ;;  %1350 = vpow2.f32 %v521_v23  ;;  %v537_v53 = vmul.f32 1.442695, %v506_v49  ;;  %v525_v59 = vmul.f32 1.442695, %v500_v45 }
 0x279   :  { %v502_v0 = vsub.f32 %v1664_v24, %v458_v1  ;;  %v527_v2 = vmul.f32 1.442695, %v501_v58  ;;  %v466_v46 = vrot.slane %v408_v14, %v1729_v43  ;;  %v503_v6 = vsub.f32 %v1701_v62, %v462_v19 }
 0x27a   :  { %1352 = vpow2.f32 %v523_v54  ;;  %v470_v24 = vrot.slane %v408_v14, %v1735_v47 }
 0x27b   :  { %v1763_v18 = vpop.eup %1336  ;;  %1354 = vpow2.f32 %v537_v53  ;;  %v529_v15 = vmul.f32 1.442695, %v502_v0  ;;  %v504_v7 = vsub.f32 %v1691_v55, %v466_v46  ;;  %v531_v11 = vmul.f32 1.442695, %v503_v6 }
 0x27c   :  { %v1765_v50 = vpop.eup %1338  ;;  %556 = vperm.xlu0 %1334, %v1763_v18   ;;  %1356 = vpow2.f32 %v525_v59  ;;  %v505_v62 = vsub.f32 %v1710_v5, %v470_v24 }
 0x27d   :  { %559 = vperm.xlu1 %1335, %v1765_v50   ;;  %v1771_v56 = vpop.eup %1340  ;;  %1358 = vpow2.f32 %v527_v2  ;;  %v533_v13 = vmul.f32 1.442695, %v504_v7 }
 0x27e   :  { %v1773_v57 = vpop.eup %1342  ;;  %1360 = vpow2.f32 %v529_v15  ;;  %v535_v8 = vmul.f32 1.442695, %v505_v62 }
 0x27f   :  { %v1779_v61 = vpop.eup %1344  ;;  %1362 = vpow2.f32 %v531_v11 }
 0x280   :  { %571 = vperm.xlu0 %1334, %v1773_v57   ;;  %v1781_v63 = vpop.eup %1346  ;;  %1364 = vpow2.f32 %v533_v13 }
 0x281   :  { %562 = vperm.xlu1 %1335, %v1771_v56   ;;  %v1787_v3 = vpop.eup %1348  ;;  %1366 = vpow2.f32 %v535_v8 }
 0x282   :  { %v1789_v4 = vpop.eup %1350 }
 0x284   :  { %574 = vperm.xlu0 %1334, %v1781_v63   ;;  %v1795_v10 = vpop.eup %1352 }
 0x285   :  { %565 = vperm.xlu1 %1335, %v1779_v61   ;;  %v1797_v12 = vpop.eup %1354 }
 0x286   :  { %v1803_v16 = vpop.eup %1356 }
 0x287   :  { %v1807_v20 = vpop.eup %1358 }
 0x288   :  { %577 = vperm.xlu0 %1334, %v1789_v4   ;;  %v1810_v21 = vpop.eup %1360 }
 0x289   :  { %568 = vperm.xlu1 %1335, %v1787_v3   ;;  %v1813_v55 = vpop.eup %1362 }
 0x28a   :  { %v1816_v14 = vpop.eup %1364 }
 0x28b   :  { %v1819_v5 = vpop.eup %1366 }
 0x28c   :  { %601 = vperm.xlu0 %1334, %v1797_v12  }
 0x28d   :  { %580 = vperm.xlu1 %1335, %v1795_v10  }
 0x291   :  { %583 = vperm.xlu1 %1335, %v1803_v16  }
 0x295   :  { %586 = vperm.xlu1 %1335, %v1807_v20  }
 0x299   :  { %589 = vperm.xlu1 %1335, %v1810_v21  }
 0x29d   :  { %592 = vperm.xlu1 %1335, %v1813_v55  }
 0x2a1   :  { %595 = vperm.xlu1 %1335, %v1816_v14  }
 0x2a5   :  { %598 = vperm.xlu1 %1335, %v1819_v5  }
 0x2fb   :  { %v557_v22 = vpop.permute.xlu0 %556 }
 0x2fc   :  { %v560_v23 = vpop.permute.xlu1 %559  ;;  %v606_v51 = vrot.slane %v557_v22, %v1650_v17 }
 0x2fd   :  { %v610_v54 = vrot.slane %v560_v23, %v1650_v17 }
 0x2ff   :  { %v572_v49 = vpop.permute.xlu0 %571  ;;  %v667_v59 = vsel %vm379_vm0, %v610_v54, %v606_v51 }
 0x300   :  { %v563_v48 = vpop.permute.xlu1 %562  ;;  %v626_v6 = vrot.slane %v572_v49, %v1650_v17 }
 0x301   :  { %v614_v1 = vrot.slane %v563_v48, %v1650_v17 }
 0x303   :  { %v575_v53 = vpop.permute.xlu0 %574  ;;  %v668_v0 = vsel %vm381_vm1, %v614_v1, %v667_v59 }
 0x304   :  { %v566_v45 = vpop.permute.xlu1 %565  ;;  %v630_v24 = vrot.slane %v575_v53, %v1650_v17 }
 0x305   :  { %v618_v58 = vrot.slane %v566_v45, %v1650_v17 }
 0x307   :  { %v578_v46 = vpop.permute.xlu0 %577  ;;  %v669_v15 = vsel %vm383_vm2, %v618_v58, %v668_v0 }
 0x308   :  { %v569_v19 = vpop.permute.xlu1 %568  ;;  %v634_v11 = vrot.slane %v578_v46, %v1650_v17 }
 0x309   :  { %v622_v2 = vrot.slane %v569_v19, %v1650_v17 }
 0x30b   :  { %v670_v7 = vsel %vm385_vm3, %v622_v2, %v669_v15  ;;  %v602_v46 = vpop.permute.xlu0 %601 }
 0x30c   :  { %v581_v62 = vpop.permute.xlu1 %580  ;;  %v671_v13 = vsel %vm387_vm4, %v626_v6, %v670_v7 }
 0x30d   :  { %v672_v8 = vsel %vm389_vm5, %v630_v24, %v671_v13  ;;  %v638_v1 = vrot.slane %v581_v62, %v1650_v17  ;;  %v666_v62 = vrot.slane %v602_v46, %v1650_v17 }
 0x30e   :  { %v673_v22 = vsel %vm391_vm6, %v634_v11, %v672_v8 }
 0x30f   :  { %v683_v23 = vsel %vm402_vm7, %v673_v22, 0.0 }
 0x310   :  { %v584_v48 = vpop.permute.xlu1 %583  ;;  %684 = vadd.xlane.f32.xlu1 %v683_v23 }
 0x311   :  { %v642_v45 = vrot.slane %v584_v48, %v1650_v17 }
 0x313   :  { %v674_v0 = vsel %vm379_vm0, %v642_v45, %v638_v1 }
 0x314   :  { %v587_v49 = vpop.permute.xlu1 %586 }
 0x315   :  { %v646_v53 = vrot.slane %v587_v49, %v1650_v17 }
 0x317   :  { %v675_v6 = vsel %vm381_vm1, %v646_v53, %v674_v0 }
 0x318   :  { %v590_v54 = vpop.permute.xlu1 %589 }
 0x319   :  { %v650_v58 = vrot.slane %v590_v54, %v1650_v17 }
 0x31b   :  { %v676_v15 = vsel %vm383_vm2, %v650_v58, %v675_v6 }
 0x31c   :  { %v593_v51 = vpop.permute.xlu1 %592 }
 0x31d   :  { %v654_v19 = vrot.slane %v593_v51, %v1650_v17 }
 0x31f   :  { %v677_v7 = vsel %vm385_vm3, %v654_v19, %v676_v15 }
 0x320   :  { %v596_v59 = vpop.permute.xlu1 %595 }
 0x321   :  { %v658_v2 = vrot.slane %v596_v59, %v1650_v17 }
 0x323   :  { %v678_v13 = vsel %vm387_vm4, %v658_v2, %v677_v7 }
 0x324   :  { %v599_v24 = vpop.permute.xlu1 %598 }
 0x325   :  { %v662_v11 = vrot.slane %v599_v24, %v1650_v17 }
 0x327   :  { %v679_v8 = vsel %vm389_vm5, %v662_v11, %v678_v13 }
 0x328   :  { %v680_v22 = vsel %vm391_vm6, %v666_v62, %v679_v8 }
 0x329   :  { %v686_v23 = vsel %vm402_vm7, %v680_v22, 0.0 }
 0x32a   :  { %687 = vadd.xlane.f32.xlu0 %v686_v23 }
 0x39d   :  { %v685_v48 = vpop.xlane.xlu1 %684 }
 0x39e   :  { %v698_v49 = vrot.slane %v685_v48, %v1723_v41  ;;  %v694_v54 = vrot.slane %v685_v48, %v1720_v40  ;;  %v702_v51 = vrot.slane %v685_v48, %v1726_v42  ;;  %v706_v45 = vrot.slane %v685_v48, %v1732_v44 }
 0x39f   :  { %v710_v17 = vrot.slane %v685_v48, %v1741_v52  ;;  %v714_v53 = vrot.slane %v685_v48, %v1729_v43  ;;  %v718_v19 = vrot.slane %v685_v48, %v1735_v47  ;;  %v722_v22 = vrot.slane %v685_v48, %v1749_v60 }
 0x3a0   :  { %1368 = vrcp.f32 %v698_v49 }
 0x3a1   :  { %1370 = vrcp.f32 %v694_v54 }
 0x3a2   :  { %1372 = vrcp.f32 %v702_v51 }
 0x3a3   :  { %1374 = vrcp.f32 %v706_v45 }
 0x3a4   :  { %1376 = vrcp.f32 %v710_v17  ;;  %v88_v17 = vld [vmem:[#allocation7] sm:$0xff] }
 0x3a5   :  { %1378 = vrcp.f32 %v714_v53  ;;  %v89_v53 = vld [vmem:[#allocation7 + $0x8] sm:$0xff] }
 0x3a6   :  { %1380 = vrcp.f32 %v718_v19 }
 0x3aa   :  { %v1369_v1 = vpop.eup %1368 }
 0x3ab   :  { %v1371_v58 = vpop.eup %1370  ;;  %v774_v59 = vmul.f32 %v1369_v1, %v1765_v50  ;;  %v1295_v1 = vpack.c.bf16 %v89_v53, %v88_v17 }
 0x3ac   :  { %v1373_v0 = vpop.eup %1372  ;;  %v772_v2 = vmul.f32 %v1371_v58, %v1763_v18  ;;  %v91_v58 = vld [vmem:[#allocation7 + $0x18] sm:$0xff] }
 0x3ad   :  { %v1375_v46 = vpop.eup %1374  ;;  %810 = vperm.xlu1 %1335, %v774_v59   ;;  %v776_v6 = vmul.f32 %v1373_v0, %v1771_v56  ;;  %1296 = vmatprep.subr.bf16.mxu1 %v1295_v1  ;;  %v93_v0 = vld [vmem:[#allocation7 + $0x28] sm:$0xff] }
 0x3ae   :  { %805 = vperm.xlu0 %1334, %v772_v2   ;;  %v778_v15 = vmul.f32 %v1375_v46, %v1779_v61  ;;  %v1377_v24 = vpop.eup %1376  ;;  %1298 = vmatpush3.bf16.msra.mxu1 %v1295_v1 }
 0x3af   :  { %v780_v7 = vmul.f32 %v1377_v24, %v1787_v3  ;;  %v1379_v50 = vpop.eup %1378  ;;  %v96_v24 = vld [vmem:[#allocation7 + $0x40] sm:$0xff] }
 0x3b0   :  { %v782_v62 = vmul.f32 %v1379_v50, %v1773_v57  ;;  %v1381_v56 = vpop.eup %1380  ;;  %v98_v50 = vld [vmem:[#allocation7 + $0x50] sm:$0xff] }
 0x3b1   :  { %815 = vperm.xlu1 %1335, %v776_v6   ;;  %v784_v61 = vmul.f32 %v1381_v56, %v1781_v63  ;;  %v95_v6 = vld [vmem:[#allocation7 + $0x38] sm:$0xff] }
 0x3b2   :  { %820 = vperm.xlu0 %1334, %v778_v15   ;;  %v103_v56 = vld [vmem:[#allocation7 + $0x78] sm:$0xff] }
 0x3b6   :  { %825 = vperm.xlu0 %1334, %v780_v7   ;;  %v97_v7 = vld [vmem:[#allocation7 + $0x48] sm:$0xff] }
 0x3b7   :  { %v688_v11 = vpop.xlane.xlu0 %687 }
 0x3b8   :  { %v730_v18 = vrot.slane %v688_v11, %v1723_v41  ;;  %v726_v13 = vrot.slane %v688_v11, %v1720_v40  ;;  %v734_v8 = vrot.slane %v688_v11, %v1726_v42  ;;  %v738_v3 = vrot.slane %v688_v11, %v1732_v44 }
 0x3b9   :  { %v754_v57 = vrot.slane %v688_v11, %v1749_v60  ;;  %v742_v40 = vrot.slane %v688_v11, %v1741_v52  ;;  %v746_v42 = vrot.slane %v688_v11, %v1729_v43  ;;  %v750_v44 = vrot.slane %v688_v11, %v1735_v47  ;;  %v99_v11 = vld [vmem:[#allocation7 + $0x58] sm:$0xff] }
 0x3ba   :  { %830 = vperm.xlu0 %1334, %v782_v62   ;;  %1382 = vrcp.f32 %v730_v18  ;;  %v1315_v62 = vpack.c.bf16 %v99_v11, %v98_v50  ;;  %v100_v18 = vld [vmem:[#allocation7 + $0x60] sm:$0xff] }
 0x3bb   :  { %1384 = vrcp.f32 %v726_v13  ;;  %v102_v13 = vld [vmem:[#allocation7 + $0x70] sm:$0xff] }
 0x3bc   :  { %1386 = vrcp.f32 %v734_v8 }
 0x3bd   :  { %1388 = vrcp.f32 %v722_v22  ;;  %v1323_v22 = vpack.c.bf16 %v103_v56, %v102_v13 }
 0x3be   :  { %835 = vperm.xlu0 %1334, %v784_v61   ;;  %1390 = vrcp.f32 %v738_v3 }
 0x3bf   :  { %1392 = vrcp.f32 %v754_v57 }
 0x3c0   :  { %1394 = vrcp.f32 %v742_v40 }
 0x3c1   :  { %1396 = vrcp.f32 %v746_v42 }
 0x3c2   :  { %1398 = vrcp.f32 %v750_v44 }
 0x3c4   :  { %v1383_v41 = vpop.eup %1382 }
 0x3c5   :  { %v1385_v23 = vpop.eup %1384  ;;  %v790_v48 = vmul.f32 %v1383_v41, %v1803_v16 }
 0x3c6   :  { %v1387_v49 = vpop.eup %1386  ;;  %v788_v63 = vmul.f32 %v1385_v23, %v1795_v10 }
 0x3c7   :  { %v1389_v54 = vpop.eup %1388  ;;  %850 = vperm.xlu1 %1335, %v790_v48   ;;  %v792_v60 = vmul.f32 %v1387_v49, %v1807_v20 }
 0x3c8   :  { %845 = vperm.xlu0 %1334, %v788_v63   ;;  %v1391_v52 = vpop.eup %1390  ;;  %v786_v51 = vmul.f32 %v1389_v54, %v1789_v4  ;;  %v90_v4 = vld [vmem:[#allocation7 + $0x10] sm:$0xff] }
 0x3c9   :  { %v1393_v45 = vpop.eup %1392  ;;  %v794_v43 = vmul.f32 %v1391_v52, %v1810_v21  ;;  %v1299_v59 = vpack.c.bf16 %v91_v58, %v90_v4 }
 0x3ca   :  { %v1395_v16 = vpop.eup %1394  ;;  %v802_v10 = vmul.f32 %v1393_v45, %v1797_v12  ;;  %v92_v12 = vld [vmem:[#allocation7 + $0x20] sm:$0xff] }
 0x3cb   :  { %855 = vperm.xlu1 %1335, %v792_v60   ;;  %v796_v47 = vmul.f32 %v1395_v16, %v1813_v55  ;;  %v1397_v20 = vpop.eup %1396  ;;  %1300 = vmatprep.subr.bf16.mxu1 %v1299_v59  ;;  %v1303_v2 = vpack.c.bf16 %v93_v0, %v92_v12  ;;  %v94_v55 = vld [vmem:[#allocation7 + $0x30] sm:$0xff] }
 0x3cc   :  { %840 = vperm.xlu0 %1334, %v786_v51   ;;  %v798_v19 = vmul.f32 %v1397_v20, %v1816_v14  ;;  %v1399_v21 = vpop.eup %1398  ;;  %1302 = vmatpush3.bf16.msra.mxu1 %v1299_v59  ;;  %v1307_v15 = vpack.c.bf16 %v95_v6, %v94_v55  ;;  %v1311_v14 = vpack.c.bf16 %v97_v7, %v96_v24 }
 0x3cd   :  { %v800_v46 = vmul.f32 %v1399_v21, %v1819_v5  ;;  %1304 = vmatprep.subr.bf16.mxu1 %v1303_v2  ;;  %v101_v5 = vld [vmem:[#allocation7 + $0x68] sm:$0xff] }
 0x3ce   :  { %v1319_v8 = vpack.c.bf16 %v101_v5, %v100_v18 }
 0x3cf   :  { %860 = vperm.xlu1 %1335, %v794_v43  }
 0x3d0   :  { %880 = vperm.xlu0 %1334, %v802_v10   ;;  %1306 = vmatpush3.bf16.msra.mxu1 %v1303_v2 }
 0x3d1   :  { %1308 = vmatprep.subr.bf16.mxu1 %v1307_v15 }
 0x3d3   :  { %865 = vperm.xlu1 %1335, %v796_v47  }
 0x3d4   :  { %1310 = vmatpush3.bf16.msra.mxu1 %v1307_v15 }
 0x3d5   :  { %1312 = vmatprep.subr.bf16.mxu1 %v1311_v14 }
 0x3d7   :  { %870 = vperm.xlu1 %1335, %v798_v19  }
 0x3d8   :  { %1314 = vmatpush3.bf16.msra.mxu1 %v1311_v14 }
 0x3d9   :  { %1316 = vmatprep.subr.bf16.mxu1 %v1315_v62 }
 0x3db   :  { %875 = vperm.xlu1 %1335, %v800_v46  }
 0x3dc   :  { %1318 = vmatpush3.bf16.msra.mxu1 %v1315_v62 }
 0x3dd   :  { %1320 = vmatprep.subr.bf16.mxu1 %v1319_v8 }
 0x3e0   :  { %1322 = vmatpush3.bf16.msra.mxu1 %v1319_v8 }
 0x3e1   :  { %1324 = vmatprep.subr.bf16.mxu1 %v1323_v22 }
 0x3e4   :  { %1326 = vmatpush3.bf16.msra.mxu1 %v1323_v22 }
 0x42c   :  { %v811_v61 = vpop.permute.xlu1 %810 }
 0x42d   :  { %v806_v3 = vpop.permute.xlu0 %805  ;;  %v884_v40 = vmul.f32 %v811_v61, %v1576_v25 }
 0x42e   :  { %v883_v41 = vmul.f32 %v806_v3, %v1573_v9 }
 0x42f   :  { %v905_v49 = vrot.slane %v884_v40, 4 }
 0x430   :  { %v816_v42 = vpop.permute.xlu1 %815  ;;  %v899_v63 = vrot.slane %v883_v41, 4 }
 0x431   :  { %v821_v57 = vpop.permute.xlu0 %820  ;;  %v885_v48 = vmul.f32 %v816_v42, %v1578_v26  ;;  %v906_v51 = vadd.f32 %v905_v49, %v884_v40 }
 0x432   :  { %v886_v54 = vmul.f32 %v821_v57, %v1582_v27  ;;  %v900_v45 = vadd.f32 %v899_v63, %v883_v41 }
 0x433   :  { %v911_v60 = vrot.slane %v885_v48, 4  ;;  %v907_v53 = vrot.slane %v906_v51, 2 }
 0x434   :  { %v917_v16 = vrot.slane %v886_v54, 4  ;;  %v901_v26 = vrot.slane %v900_v45, 2 }
 0x435   :  { %v826_v23 = vpop.permute.xlu0 %825  ;;  %v912_v10 = vadd.f32 %v911_v60, %v885_v48  ;;  %v908_v58 = vadd.f32 %v907_v53, %v906_v51 }
 0x436   :  { %v887_v52 = vmul.f32 %v826_v23, %v1584_v28  ;;  %v918_v47 = vadd.f32 %v917_v16, %v886_v54  ;;  %v902_v59 = vadd.f32 %v901_v26, %v900_v45 }
 0x437   :  { %v913_v27 = vrot.slane %v912_v10, 2  ;;  %v909_v2 = vrot.slane %v908_v58, 1 }
 0x438   :  { %v923_v9 = vrot.slane %v887_v52, 4  ;;  %v919_v19 = vrot.slane %v918_v47, 2  ;;  %v903_v46 = vrot.slane %v902_v59, 1 }
 0x439   :  { %v831_v44 = vpop.permute.xlu0 %830  ;;  %v914_v12 = vadd.f32 %v913_v27, %v912_v10  ;;  %v910_v62 = vadd.f32 %v909_v2, %v908_v58 }
 0x43a   :  { %v888_v43 = vmul.f32 %v831_v44, %v1588_v29  ;;  %v924_v4 = vadd.f32 %v923_v9, %v887_v52  ;;  %v920_v24 = vadd.f32 %v919_v19, %v918_v47  ;;  %v904_v18 = vadd.f32 %v903_v46, %v902_v59 }
 0x43b   :  { %v915_v14 = vrot.slane %v914_v12, 1 }
 0x43c   :  { %v929_v1 = vrot.slane %v888_v43, 4  ;;  %v925_v29 = vrot.slane %v924_v4, 2  ;;  %v921_v3 = vrot.slane %v920_v24, 1  ;;  %v1011_v23 = vsel %vm379_vm0, %v910_v62, %v904_v18 }
 0x43d   :  { %v836_v25 = vpop.permute.xlu0 %835  ;;  %v916_v40 = vadd.f32 %v915_v14, %v914_v12 }
 0x43e   :  { %v889_v17 = vmul.f32 %v836_v25, %v1590_v30  ;;  %v930_v28 = vadd.f32 %v929_v1, %v888_v43  ;;  %v926_v50 = vadd.f32 %v925_v29, %v924_v4  ;;  %v922_v52 = vadd.f32 %v921_v3, %v920_v24 }
 0x43f   :  { %v1012_v10 = vsel %vm381_vm1, %v916_v40, %v1011_v23 }
 0x440   :  { %v935_v20 = vrot.slane %v889_v17, 4  ;;  %v931_v55 = vrot.slane %v930_v28, 2  ;;  %v1013_v4 = vsel %vm383_vm2, %v922_v52, %v1012_v10 }
 0x442   :  { %v936_v21 = vadd.f32 %v935_v20, %v889_v17  ;;  %v932_v5 = vadd.f32 %v931_v55, %v930_v28 }
 0x444   :  { %v937_v7 = vrot.slane %v936_v21, 2  ;;  %v933_v48 = vrot.slane %v932_v5, 1 }
 0x446   :  { %v851_v0 = vpop.permute.xlu1 %850  ;;  %v938_v57 = vadd.f32 %v937_v7, %v936_v21  ;;  %v934_v9 = vadd.f32 %v933_v48, %v932_v5 }
 0x447   :  { %v846_v6 = vpop.permute.xlu0 %845  ;;  %v892_v30 = vmul.f32 %v851_v0, %v1600_v33 }
 0x448   :  { %v891_v15 = vmul.f32 %v846_v6, %v1596_v32  ;;  %v927_v32 = vrot.slane %v926_v50, 1 }
 0x449   :  { %v953_v56 = vrot.slane %v892_v30, 4 }
 0x44a   :  { %v856_v11 = vpop.permute.xlu1 %855  ;;  %v947_v22 = vrot.slane %v891_v15, 4  ;;  %v928_v43 = vadd.f32 %v927_v32, %v926_v50 }
 0x44b   :  { %v893_v13 = vmul.f32 %v856_v11, %v1602_v34  ;;  %v841_v8 = vpop.permute.xlu0 %840  ;;  %v954_v54 = vadd.f32 %v953_v56, %v892_v30 }
 0x44c   :  { %v890_v61 = vmul.f32 %v841_v8, %v1594_v31  ;;  %v948_v34 = vadd.f32 %v947_v22, %v891_v15  ;;  %v939_v31 = vrot.slane %v938_v57, 1  ;;  %v1014_v19 = vsel %vm385_vm3, %v928_v43, %v1013_v4 }
 0x44d   :  { %v959_v33 = vrot.slane %v893_v13, 4  ;;  %v1015_v29 = vsel %vm387_vm4, %v934_v9, %v1014_v19 }
 0x44e   :  { %v941_v41 = vrot.slane %v890_v61, 4  ;;  %v861_v42 = vpop.permute.xlu1 %860  ;;  %v949_v26 = vrot.slane %v948_v34, 2 }
 0x44f   :  { %v894_v49 = vmul.f32 %v861_v42, %v1606_v35  ;;  %v881_v63 = vpop.permute.xlu0 %880  ;;  %v960_v51 = vadd.f32 %v959_v33, %v893_v13  ;;  %v955_v35 = vrot.slane %v954_v54, 2 }
 0x450   :  { %v942_v44 = vadd.f32 %v941_v41, %v890_v61  ;;  %v898_v60 = vmul.f32 %v881_v63, %v1618_v39  ;;  %v940_v39 = vadd.f32 %v939_v31, %v938_v57  ;;  %v950_v0 = vadd.f32 %v949_v26, %v948_v34 }
 0x451   :  { %v965_v45 = vrot.slane %v894_v49, 4  ;;  %v961_v20 = vrot.slane %v960_v51, 2 }
 0x452   :  { %v943_v16 = vrot.slane %v942_v44, 2  ;;  %v866_v25 = vpop.permute.xlu1 %865  ;;  %v989_v47 = vrot.slane %v898_v60, 4  ;;  %v1016_v15 = vsel %vm389_vm5, %v940_v39, %v1015_v29  ;;  %v951_v18 = vrot.slane %v950_v0, 1 }
 0x453   :  { %v966_v17 = vadd.f32 %v965_v45, %v894_v49  ;;  %v895_v53 = vmul.f32 %v866_v25, %v1608_v36  ;;  %v956_v36 = vadd.f32 %v955_v35, %v954_v54  ;;  %v962_v55 = vadd.f32 %v961_v20, %v960_v51 }
 0x454   :  { %v944_v1 = vadd.f32 %v943_v16, %v942_v44  ;;  %v990_v2 = vadd.f32 %v989_v47, %v898_v60  ;;  %v952_v40 = vadd.f32 %v951_v18, %v950_v0 }
 0x455   :  { %v971_v27 = vrot.slane %v895_v53, 4  ;;  %v967_v58 = vrot.slane %v966_v17, 2  ;;  %v963_v13 = vrot.slane %v962_v55, 1 }
 0x456   :  { %v871_v59 = vpop.permute.xlu1 %870  ;;  %v945_v28 = vrot.slane %v944_v1, 1  ;;  %v991_v5 = vrot.slane %v990_v2, 2 }
 0x457   :  { %v972_v21 = vadd.f32 %v971_v27, %v895_v53  ;;  %v896_v12 = vmul.f32 %v871_v59, %v1612_v37  ;;  %v968_v24 = vadd.f32 %v967_v58, %v966_v17  ;;  %v957_v37 = vrot.slane %v956_v36, 1 }
 0x458   :  { %v946_v46 = vadd.f32 %v945_v28, %v944_v1  ;;  %v992_v32 = vadd.f32 %v991_v5, %v990_v2  ;;  %v964_v41 = vadd.f32 %v963_v13, %v962_v55 }
 0x459   :  { %v973_v6 = vrot.slane %v972_v21, 2  ;;  %v977_v30 = vrot.slane %v896_v12, 4  ;;  %v969_v22 = vrot.slane %v968_v24, 1  ;;  %v958_v33 = vadd.f32 %v957_v37, %v956_v36 }
 0x45a   :  { %v876_v7 = vpop.permute.xlu1 %875  ;;  %v1017_v14 = vsel %vm391_vm6, %v946_v46, %v1016_v15  ;;  %v993_v54 = vrot.slane %v992_v32, 1 }
 0x45b   :  { %v974_v50 = vadd.f32 %v973_v6, %v972_v21  ;;  %v978_v11 = vadd.f32 %v977_v30, %v896_v12  ;;  %v897_v62 = vmul.f32 %v876_v7, %v1614_v38  ;;  %1260 = vmatprep.mubr.f32.mxu1 %v1017_v14  ;;  %v970_v48 = vadd.f32 %v969_v22, %v968_v24 }
 0x45c   :  { %v1018_v63 = vsel %vm379_vm0, %v958_v33, %v952_v40  ;;  %v994_v45 = vadd.f32 %v993_v54, %v992_v32 }
 0x45d   :  { %v979_v8 = vrot.slane %v978_v11, 2  ;;  %v983_v56 = vrot.slane %v897_v62, 4  ;;  %v975_v61 = vrot.slane %v974_v50, 1  ;;  %v1019_v44 = vsel %vm381_vm1, %v964_v41, %v1018_v63 }
 0x45e   :  { %v1020_v52 = vsel %vm383_vm2, %v970_v48, %v1019_v44 }
 0x45f   :  { %v980_v3 = vadd.f32 %v979_v8, %v978_v11  ;;  %v984_v57 = vadd.f32 %v983_v56, %v897_v62  ;;  %v976_v49 = vadd.f32 %v975_v61, %v974_v50 }
 0x461   :  { %v981_v42 = vrot.slane %v980_v3, 1  ;;  %v985_v23 = vrot.slane %v984_v57, 2  ;;  %v1021_v51 = vsel %vm385_vm3, %v976_v49, %v1020_v52 }
 0x463   :  { %v986_v38 = vadd.f32 %v985_v23, %v984_v57  ;;  %v982_v34 = vadd.f32 %v981_v42, %v980_v3 }
 0x465   :  { %v987_v60 = vrot.slane %v986_v38, 1  ;;  %v1022_v43 = vsel %vm387_vm4, %v982_v34, %v1021_v51 }
 0x467   :  { %v988_v31 = vadd.f32 %v987_v60, %v986_v38 }
 0x469   :  { %v1023_v16 = vsel %vm389_vm5, %v988_v31, %v1022_v43 }
 0x46a   :  { %v1024_v25 = vsel %vm391_vm6, %v994_v45, %v1023_v16 }
 0x46b   :  { %1261 = vmatmul.mubr.f32.vlgmr.msra.gmra.mrb[0].mxu1 %v1024_v25 }
 0x53e   :  { %v1262_v10 = vpop.f32.mrb[0].mxu1 }
 0x53f   :  { %1103 = vst [vmem:[#allocation8 + $0x8] sm:$0xff] %v1262_v10  ;;  %v1093_v9 = vpop.f32.mrb[1].mxu1 }
 0x540   :  { %1102 = vst [vmem:[#allocation8] sm:$0xff] %v1093_v9 }
 0x541   :  { %1477 = shalt.err (!%p1474_p0)
}
 0x542   :  { %s1478_s27 = scalar_lea.hbm %s1934_s3, 256 }
 0x543   :  { %p1479_p1 = scmp.ne.s32.totalorder %s1934_s3, %s1478_s27  ;;  %p1482_p2 = scmp.lt.u32.totalorder %s1478_s27, %s1934_s3 }
 0x545   :  { %p1484_p3 = pnand %p1482_p2, %p1479_p1 }
 0x547   :  { %1487 = shalt.err (!%p1484_p3)
}
 0x548   :  { %1115 = dma.vmem_to_hbm [thread:$0]  %s1110_s21, 256, %s1934_s3, [#allocation4], %s1496_s24, %s1496_s24, %s1497_s25  }
 0x549   :  { %1492 = dma.done.wait [#allocation4], 256  }
 0x54a   :  { %1493 = vsyncadd [#allocation4], 4294967040 }
 0x54b   :  { %1119 = vsyncpa [#allocation3], 1 }
 0x54c   :  { %1120 = vsyncpa [#allocation6], 1 }
 0x54d   :  { %1121 = vsyncpa [#allocation4], 1 }

</bundles_post_ra>
